<compile_context>
chip_gen: v7x
topology: tpu7x:2x2x1
jax: 0.10.0
libtpu: 0.0.40
codegen_flags: <defaults>
</compile_context>

<pallas_src>
import jax
import jax.numpy as jnp
from jax.experimental import pallas as pl
from jax.experimental.pallas import tpu as pltpu


# ---------------------------------------------------------------------------
# Kernels
# ---------------------------------------------------------------------------

def _scale_full_kernel(x_ref, a_ref, o_ref):
    # Per-element multiply: both operands streamed HBM -> VMEM.
    o_ref[...] = x_ref[...] * a_ref[...]


def _scale_scalar_kernel(x_ref, alpha_ref, o_ref):
    # alpha lives in SMEM as a single (1, 1) scalar; only x is streamed.
    o_ref[...] = x_ref[...] * alpha_ref[0, 0]


# ---------------------------------------------------------------------------
# Tiling helpers
# ---------------------------------------------------------------------------

_LANE_WIDTHS = (4096, 2048, 1024, 512, 256, 128)   # last-dim candidates
_TARGET_TILE_BYTES = 2 * 1024 * 1024               # ~2 MiB per streamed tile
_VMEM_LIMIT_BYTES = 32 * 1024 * 1024               # safe on v5e/v6e/v7x


def _lane_dense_view(arr):
    """Row-major reshape to a lane-dense (rows, width) slab.

    Returns (slab, total_elements, was_padded). No pad / no extra HBM pass
    when total is divisible by one of the candidate widths (the common case).
    """
    total = arr.size
    for width in _LANE_WIDTHS:
        if total % width == 0:
            return arr.reshape(total // width, width), total, False
    # Ragged tail (rare): pad to a multiple of 128 lanes in HBM.
    # TODO(synk): handle the ragged tail with an in-kernel masked store
    # instead of a wrapper-side pad.
    width = 128
    rows = pl.cdiv(total, width)
    flat = jnp.pad(arr.reshape(-1), (0, rows * width - total))
    return flat.reshape(rows, width), total, True


def _pick_tile_rows(rows, width, itemsize):
    """Largest tile_rows giving ~_TARGET_TILE_BYTES per tile (multiple of 8)."""
    target_rows = max(8, _TARGET_TILE_BYTES // (width * itemsize))
    if rows <= target_rows:
        return rows                     # single block == full slab (always legal)
    return max(8, (target_rows // 8) * 8)


def _compiler_params():
    return pltpu.CompilerParams(
        dimension_semantics=("parallel",),
        vmem_limit_bytes=_VMEM_LIMIT_BYTES,
    )


# ---------------------------------------------------------------------------
# Forward paths
# ---------------------------------------------------------------------------

def _scale_by_scalar(x, alpha):
    """x * alpha with alpha a single scalar parameter (SMEM fast path)."""
    orig_shape = x.shape
    xf, total, padded = _lane_dense_view(x)
    rows, width = xf.shape
    tile_rows = _pick_tile_rows(rows, width, x.dtype.itemsize)
    grid = (pl.cdiv(rows, tile_rows),)

    out = pl.pallas_call(
        _scale_scalar_kernel,
        out_shape=jax.ShapeDtypeStruct((rows, width), x.dtype),
        grid=grid,
        in_specs=[
            pl.BlockSpec((tile_rows, width), lambda i: (i, 0)),
            pl.BlockSpec(memory_space=pltpu.MemorySpace.SMEM),
        ],
        out_specs=pl.BlockSpec((tile_rows, width), lambda i: (i, 0)),
        compiler_params=_compiler_params(),
    )(xf, alpha.reshape(1, 1))

    if padded:
        return out.reshape(-1)[:total].reshape(orig_shape)
    return out.reshape(orig_shape)


def _scale_elementwise(x, alpha_b):
    """x * alpha with alpha materialized at x's shape (per-element params)."""
    orig_shape = x.shape
    xf, total, padded = _lane_dense_view(x)
    af, _, _ = _lane_dense_view(alpha_b)
    rows, width = xf.shape
    tile_rows = _pick_tile_rows(rows, width, x.dtype.itemsize)
    grid = (pl.cdiv(rows, tile_rows),)

    out = pl.pallas_call(
        _scale_full_kernel,
        out_shape=jax.ShapeDtypeStruct((rows, width), x.dtype),
        grid=grid,
        in_specs=[
            pl.BlockSpec((tile_rows, width), lambda i: (i, 0)),
            pl.BlockSpec((tile_rows, width), lambda i: (i, 0)),
        ],
        out_specs=pl.BlockSpec((tile_rows, width), lambda i: (i, 0)),
        compiler_params=_compiler_params(),
    )(xf, af)

    if padded:
        return out.reshape(-1)[:total].reshape(orig_shape)
    return out.reshape(orig_shape)


def scale_forward(x, alpha):
    """Compute x * alpha (broadcasting alpha like the torch module)."""
    alpha = alpha.astype(x.dtype)
    if alpha.size == 1:
        # Default Scale(shape=(1,)) case: scalar alpha in SMEM, 2N HBM traffic.
        return _scale_by_scalar(x, alpha)
    # Per-element (or broadcastable) alpha: stream both operands.
    alpha_b = jnp.broadcast_to(alpha, x.shape)
    return _scale_elementwise(x, alpha_b)


class ScalePallas:
    """JAX/Pallas equivalent of learn2learn.nn.Scale."""

    def __init__(self, shape=None, alpha=1.0, dtype=jnp.float32):
        if isinstance(shape, int):
            shape = (shape,)
        elif shape is None:
            shape = (1,)
        # Deterministic init, matching torch.ones(*shape) * alpha
        self.alpha = jnp.ones(shape, dtype=dtype) * alpha

    def __call__(self, x):
        return scale_forward(x, self.alpha)


if __name__ == "__main__":
    key = jax.random.PRNGKey(0)
    # NCHW example input, small shapes
    x = jax.random.normal(key, (2, 4, 16, 16), dtype=jnp.float32)

    # Per-element alpha (the learn2learn example usage: shape == x.shape).
    scale_full = ScalePallas(shape=x.shape, alpha=0.5)
    y_full = jax.block_until_ready(scale_full(x))
    ref_full = x * jnp.broadcast_to(scale_full.alpha, x.shape)
    assert y_full.shape == x.shape
    assert jnp.allclose(y_full, ref_full, atol=1e-6), "mismatch (elementwise path)"

    # Default shape=(1,) -> scalar-alpha SMEM fast path.
    scale_scalar = ScalePallas(alpha=0.25)
    y_scalar = jax.block_until_ready(scale_scalar(x))
    assert y_scalar.shape == x.shape
    assert jnp.allclose(y_scalar, x * 0.25, atol=1e-6), "mismatch (scalar path)"

    print("KERNEL_OK")
</pallas_src>

<mosaic_0001>
module attributes {stable_mosaic.version = 11 : i64} {
  func.func @_scale_full_kernel(%arg0: i32, %arg1: memref<1x2048xf32, #tpu.memory_space<vmem>>, %arg2: memref<1x2048xf32, #tpu.memory_space<vmem>>, %arg3: memref<1x2048xf32, #tpu.memory_space<vmem>>) attributes {dimension_semantics = [#tpu.dimension_semantics<parallel>], iteration_bounds = array<i64: 1>, scalar_prefetch = 0 : i64, scratch_operands = 0 : i64, tpu.core_type = #tpu.core_type<tc>, window_params = [{transform_indices = @transform_0, window_bounds = array<i64: 1, 2048>}, {transform_indices = @transform_1, window_bounds = array<i64: 1, 2048>}, {transform_indices = @transform_2, window_bounds = array<i64: 1, 2048>}]} {
    %c0 = arith.constant 0 : index
    %c0_0 = arith.constant 0 : index
    %0 = vector.load %arg1[%c0, %c0_0] : memref<1x2048xf32, #tpu.memory_space<vmem>>, vector<1x2048xf32>
    %c0_1 = arith.constant 0 : index
    %c0_2 = arith.constant 0 : index
    %1 = vector.load %arg2[%c0_1, %c0_2] : memref<1x2048xf32, #tpu.memory_space<vmem>>, vector<1x2048xf32>
    %2 = arith.mulf %0, %1 : vector<1x2048xf32>
    %c0_3 = arith.constant 0 : index
    %c0_4 = arith.constant 0 : index
    %3 = vector.load %arg3[%c0_3, %c0_4] : memref<1x2048xf32, #tpu.memory_space<vmem>>, vector<1x2048xf32>
    tpu.vector_store %arg3[%c0_3, %c0_4], %2 {strides = array<i32>} : memref<1x2048xf32, #tpu.memory_space<vmem>>, vector<1x2048xf32>,
    return
  }
  func.func @transform_0(%arg0: i32) -> (i32, i32) {
    %c0_i32 = arith.constant 0 : i32
    %c0_i32_0 = arith.constant 0 : i32
    return %arg0, %c0_i32 : i32, i32
  }
  func.func @transform_1(%arg0: i32) -> (i32, i32) {
    %c0_i32 = arith.constant 0 : i32
    %c0_i32_0 = arith.constant 0 : i32
    return %arg0, %c0_i32 : i32, i32
  }
  func.func @transform_2(%arg0: i32) -> (i32, i32) {
    %c0_i32 = arith.constant 0 : i32
    %c0_i32_0 = arith.constant 0 : i32
    return %arg0, %c0_i32 : i32, i32
  }
}

</mosaic_0001>

<bundles_post_ra>
// kernel: tpu_custom_call.1
= control target key start
LH: loop header
LB: loop body
LE: loop exit
PB: predicated region body
PF: predicated region fallthrough
CT: control target
= control target key end

     0   :  { %7 = vsyncpa [#allocation3], 0  ;;  %s189_s0 = inlined_call_operand.hbm [shape: f32[1,2048], index: 0, kind: input, shape index: {}]   ;;  %s190_s1 = inlined_call_operand.hbm [shape: f32[1,2048], index: 1, kind: input, shape index: {}]   ;;  %s191_s2 = inlined_call_operand.hbm [shape: f32[1,2048], index: 2, kind: output, shape index: {}]  }
   0x1   :  { %8 = vsyncpa [#allocation6], 0 }
   0x2   :  { %9 = vsyncpa [#allocation4], 0  ;;  %s135_s9 = smov [#allocation2]   ;;  %s136_s11 = smov [#allocation5]  }
   0x3   :  { %s16_s10 = sshll.u32 %s135_s9, 4  ;;  %s26_s12 = sshll.u32 %s136_s11, 4  ;;  %s17_s10 = int_to_ptr.vmem [resolvable:$true] %s16_s10  ;;  %s27_s12 = int_to_ptr.vmem [resolvable:$true] %s26_s12 }
   0x4   :  { %s63_s15 = scalar_lea.hbm %s189_s0, 256 }
   0x5   :  { %p64_p0 = scmp.ne.s32.totalorder %s189_s0, %s63_s15  ;;  %p67_p1 = scmp.lt.u32.totalorder %s63_s15, %s189_s0 }
   0x7   :  { %p69_p2 = pnand %p67_p1, %p64_p0 }
   0x9   :  { %72 = shalt.err (!%p69_p2)
}
   0xa   :  { %s73_s20 = scalar_lea.vmem %s17_s10, 256  ;;  %p78_p4 = scmp.lt.s32.totalorder %s17_s10, %s17_s10 }
   0xb   :  { %p74_p3 = scmp.ne.s32.totalorder %s17_s10, %s73_s20  ;;  %p79_p5 = scmp.lt.s32.totalorder %s73_s20, %s73_s20 }
   0xd   :  { %p80_p6 = por %p79_p5, %p78_p4 }
   0xf   :  { %p81_p7 = pnand %p80_p6, %p74_p3 }
  0x11   :  { %84 = shalt.err (!%p81_p7)
}
  0x12   :  { %19 = dma.hbm_to_vmem [thread:$0]  %s189_s0, 256, %s17_s10, [#allocation3]  }
  0x13   :  { %s85_s25 = scalar_lea.hbm %s190_s1, 256 }
  0x14   :  { %p86_p8 = scmp.ne.s32.totalorder %s190_s1, %s85_s25  ;;  %p89_p9 = scmp.lt.u32.totalorder %s85_s25, %s190_s1 }
  0x16   :  { %p91_p10 = pnand %p89_p9, %p86_p8 }
  0x18   :  { %94 = shalt.err (!%p91_p10)
}
  0x19   :  { %s95_s30 = scalar_lea.vmem %s27_s12, 256  ;;  %p100_p12 = scmp.lt.s32.totalorder %s27_s12, %s27_s12 }
  0x1a   :  { %p96_p11 = scmp.ne.s32.totalorder %s27_s12, %s95_s30  ;;  %p101_p13 = scmp.lt.s32.totalorder %s95_s30, %s95_s30 }
  0x1c   :  { %p102_p0 = por %p101_p13, %p100_p12 }
  0x1e   :  { %p103_p1 = pnand %p102_p0, %p96_p11 }
  0x20   :  { %106 = shalt.err (!%p103_p1)
}
  0x21   :  { %29 = dma.hbm_to_vmem [thread:$0]  %s190_s1, 256, %s27_s12, [#allocation6]  }
  0x22   :  { %129 = dma.done.wait [#allocation3], 256  }
  0x23   :  { %130 = vsyncadd [#allocation3], 4294967040 }
  0x24   :  { %131 = dma.done.wait [#allocation6], 256  }
  0x25   :  { %132 = vsyncadd [#allocation6], 4294967040  ;;  %s137_s4 = smov [#allocation7]   ;;  %v36_v0 = vld [vmem:[#allocation2] sm:$0xff]  ;;  %v38_v1 = vld [vmem:[#allocation5] sm:$0xff] }
  0x26   :  { %s50_s5 = sshll.u32 %s137_s4, 4  ;;  %v37_v2 = vld [vmem:[#allocation2 + $0x8] sm:$0xff]  ;;  %v40_v3 = vmul.f32 %v38_v1, %v36_v0  ;;  %v39_v4 = vld [vmem:[#allocation5 + $0x8] sm:$0xff]  ;;  %s51_s5 = int_to_ptr.vmem [resolvable:$true] %s50_s5 }
  0x27   :  { %v41_v5 = vmul.f32 %v39_v4, %v37_v2  ;;  %s107_s6 = scalar_lea.vmem %s51_s5, 256  ;;  %p112_p3 = scmp.lt.s32.totalorder %s51_s5, %s51_s5 }
  0x28   :  { %42 = vst [vmem:[#allocation7] sm:$0xff] %v40_v3  ;;  %p108_p2 = scmp.ne.s32.totalorder %s51_s5, %s107_s6  ;;  %p113_p4 = scmp.lt.s32.totalorder %s107_s6, %s107_s6 }
  0x29   :  { %43 = vst [vmem:[#allocation7 + $0x8] sm:$0xff] %v41_v5 }
  0x2a   :  { %p114_p5 = por %p113_p4, %p112_p3 }
  0x2c   :  { %p115_p6 = pnand %p114_p5, %p108_p2 }
  0x2e   :  { %118 = shalt.err (!%p115_p6)
}
  0x2f   :  { %s119_s8 = scalar_lea.hbm %s191_s2, 256 }
  0x30   :  { %p120_p7 = scmp.ne.s32.totalorder %s191_s2, %s119_s8  ;;  %p123_p8 = scmp.lt.u32.totalorder %s119_s8, %s191_s2 }
  0x32   :  { %p125_p9 = pnand %p123_p8, %p120_p7 }
  0x34   :  { %128 = shalt.err (!%p125_p9)
}
  0x35   :  { %53 = dma.vmem_to_hbm [thread:$0]  %s51_s5, 256, %s191_s2, [#allocation4]  }
  0x36   :  { %133 = dma.done.wait [#allocation4], 256  }
  0x37   :  { %134 = vsyncadd [#allocation4], 4294967040 }
  0x38   :  { %57 = vsyncpa [#allocation3], 1 }
  0x39   :  { %58 = vsyncpa [#allocation6], 1 }
  0x3a   :  { %59 = vsyncpa [#allocation4], 1 }

</bundles_post_ra>
